<compile_context>
chip_gen: v7x
topology: tpu7x:2x2x1
jax: 0.10.0
libtpu: 0.0.40
codegen_flags: <defaults>
</compile_context>

<pallas_src>
import jax
import jax.numpy as jnp
from jax.experimental import pallas as pl
from jax.experimental.pallas import tpu as pltpu

_ROWS_MAX = 256     # sublane-axis tile cap (multiple of 8)
_LANES_MAX = 2048   # lane-axis tile cap (multiple of 128)


def _layer_scaler_kernel(gamma_ref, x_ref, o_ref):
    # gamma_ref: (rows, 1)   x_ref / o_ref: (rows, lanes)
    # (rows, 1) * (rows, lanes) broadcasts along lanes on the VPU.
    o_ref[...] = (gamma_ref[...] * x_ref[...]).astype(o_ref.dtype)


def _pick_tile(dim: int, cap: int) -> int:
    # Full extent is always a legal block dim; otherwise use the cap, which is
    # already a multiple of the hardware tile (8 sublanes / 128 lanes).
    # Partial boundary blocks (dim % cap != 0) are masked by Pallas.
    return dim if dim <= cap else cap


def layer_scaler(x: jax.Array, gamma: jax.Array) -> jax.Array:
    """x: (N, C, H, W), gamma: (C,) -> gamma[None, :, None, None] * x."""
    N, C, H, W = x.shape
    NC, HW = N * C, H * W
    out_dtype = jnp.promote_types(x.dtype, gamma.dtype)

    # Flat 2D views: rows are (n, c) pairs, lanes are spatial positions.
    x2 = x.reshape(NC, HW)                           # contiguous reshape: free
    gamma_rows = jnp.tile(gamma, N).reshape(NC, 1)   # row r -> gamma[r % C]; tiny

    rows = _pick_tile(NC, _ROWS_MAX)
    lanes = _pick_tile(HW, _LANES_MAX)
    grid = (pl.cdiv(NC, rows), pl.cdiv(HW, lanes))

    out2 = pl.pallas_call(
        _layer_scaler_kernel,
        out_shape=jax.ShapeDtypeStruct((NC, HW), out_dtype),
        grid_spec=pltpu.PrefetchScalarGridSpec(
            num_scalar_prefetch=0,
            grid=grid,
            in_specs=[
                # gamma: block index depends only on the row axis, so its DMA
                # is skipped across inner (lane-axis) grid steps.
                pl.BlockSpec((rows, 1), lambda r, c: (r, 0)),
                pl.BlockSpec((rows, lanes), lambda r, c: (r, c)),
            ],
            out_specs=pl.BlockSpec((rows, lanes), lambda r, c: (r, c)),
        ),
        compiler_params=pltpu.CompilerParams(
            # Every tile is independent -> megacore sharding on v7x.
            dimension_semantics=("parallel", "parallel"),
        ),
    )(gamma_rows, x2)

    return out2.reshape(N, C, H, W)


if __name__ == "__main__":
    # Module config: LayerScaler(init_value=1e-6, dimensions=C)
    init_value = 1e-6
    N, C, H, W = 2, 4, 16, 16

    key = jax.random.PRNGKey(0)
    x = jax.random.normal(key, (N, C, H, W), dtype=jnp.float32)

    # Deterministic parameter init, matching nn.Parameter(init_value * torch.ones(C))
    gamma = init_value * jnp.ones((C,), dtype=jnp.float32)

    out = layer_scaler(x, gamma)
    out = jax.block_until_ready(out)

    # Reference: plain JAX broadcast, identical to gamma[None, :, None, None] * x
    ref = gamma[None, :, None, None] * x
    assert out.shape == x.shape
    assert out.dtype == ref.dtype
    assert jnp.array_equal(out, ref), "mismatch vs reference"

    print("KERNEL_OK")
</pallas_src>

<mosaic_0001>
module attributes {stable_mosaic.version = 11 : i64} {
  func.func @_layer_scaler_kernel(%arg0: i32, %arg1: i32, %arg2: memref<8x1xf32, #tpu.memory_space<vmem>>, %arg3: memref<8x256xf32, #tpu.memory_space<vmem>>, %arg4: memref<8x256xf32, #tpu.memory_space<vmem>>) attributes {dimension_semantics = [#tpu.dimension_semantics<parallel>, #tpu.dimension_semantics<parallel>], iteration_bounds = array<i64: 1, 1>, scalar_prefetch = 0 : i64, scratch_operands = 0 : i64, tpu.core_type = #tpu.core_type<tc>, window_params = [{transform_indices = @transform_0, window_bounds = array<i64: 8, 1>}, {transform_indices = @transform_1, window_bounds = array<i64: 8, 256>}, {transform_indices = @transform_2, window_bounds = array<i64: 8, 256>}]} {
    %c0 = arith.constant 0 : index
    %c0_0 = arith.constant 0 : index
    %0 = vector.load %arg2[%c0, %c0_0] : memref<8x1xf32, #tpu.memory_space<vmem>>, vector<8x1xf32>
    %c0_1 = arith.constant 0 : index
    %c0_2 = arith.constant 0 : index
    %1 = vector.load %arg3[%c0_1, %c0_2] : memref<8x256xf32, #tpu.memory_space<vmem>>, vector<8x256xf32>
    %2 = vector.broadcast %0 : vector<8x1xf32> to vector<8x256xf32>
    %3 = arith.mulf %2, %1 : vector<8x256xf32>
    %c0_3 = arith.constant 0 : index
    %c0_4 = arith.constant 0 : index
    %4 = vector.load %arg4[%c0_3, %c0_4] : memref<8x256xf32, #tpu.memory_space<vmem>>, vector<8x256xf32>
    tpu.vector_store %arg4[%c0_3, %c0_4], %3 {strides = array<i32>} : memref<8x256xf32, #tpu.memory_space<vmem>>, vector<8x256xf32>,
    return
  }
  func.func @transform_0(%arg0: i32, %arg1: i32) -> (i32, i32) {
    %c0_i32 = arith.constant 0 : i32
    %c0_i32_0 = arith.constant 0 : i32
    return %arg0, %c0_i32 : i32, i32
  }
  func.func @transform_1(%arg0: i32, %arg1: i32) -> (i32, i32) {
    %c0_i32 = arith.constant 0 : i32
    return %arg0, %arg1 : i32, i32
  }
  func.func @transform_2(%arg0: i32, %arg1: i32) -> (i32, i32) {
    %c0_i32 = arith.constant 0 : i32
    return %arg0, %arg1 : i32, i32
  }
}

</mosaic_0001>

<bundles_post_ra>
// kernel: tpu_custom_call.1
= control target key start
LH: loop header
LB: loop body
LE: loop exit
PB: predicated region body
PF: predicated region fallthrough
CT: control target
= control target key end

     0   :  { %7 = vsyncpa [#allocation3], 0  ;;  %s148_s0 = inlined_call_operand.vmem [shape: f32[8,1], index: 0, kind: input, shape index: {}]   ;;  %s149_s1 = inlined_call_operand.hbm [shape: f32[8,256], index: 1, kind: input, shape index: {}]   ;;  %s150_s2 = inlined_call_operand.hbm [shape: f32[8,256], index: 2, kind: output, shape index: {}]  }
   0x1   :  { %8 = vsyncpa [#allocation4], 0  ;;  %s103_s9 = smov [#allocation2]   ;;  %s55_s13 = scalar_lea.hbm %s149_s1, 256 }
   0x2   :  { %s17_s10 = sshll.u32 %s103_s9, 4  ;;  %p56_p0 = scmp.ne.s32.totalorder %s149_s1, %s55_s13  ;;  %s18_s10 = int_to_ptr.vmem [resolvable:$true] %s17_s10 }
   0x3   :  { %p59_p1 = scmp.lt.u32.totalorder %s55_s13, %s149_s1 }
   0x5   :  { %p61_p2 = pnand %p59_p1, %p56_p0 }
   0x7   :  { %64 = shalt.err (!%p61_p2)
}
   0x8   :  { %s65_s18 = scalar_lea.vmem %s18_s10, 256  ;;  %p70_p4 = scmp.lt.s32.totalorder %s18_s10, %s18_s10 }
   0x9   :  { %p66_p3 = scmp.ne.s32.totalorder %s18_s10, %s65_s18  ;;  %p71_p5 = scmp.lt.s32.totalorder %s65_s18, %s65_s18 }
   0xb   :  { %p72_p6 = por %p71_p5, %p70_p4 }
   0xd   :  { %p73_p7 = pnand %p72_p6, %p66_p3 }
   0xf   :  { %76 = shalt.err (!%p73_p7)
}
  0x10   :  { %20 = dma.hbm_to_vmem [thread:$0]  %s149_s1, 256, %s18_s10, [#allocation3]  }
  0x11   :  { %99 = dma.done.wait [#allocation3], 256  }
  0x12   :  { %100 = vsyncadd [#allocation3], 4294967040  ;;  %v104_v0 = vmov 0   ;;  %v24_v1 = vld [vmem:[%s148_s0] sm:$0xff]  ;;  %v26_v3 = vld [vmem:[#allocation2 + $0x8] sm:$0xff]  ;;  %s105_s23 = smov [#allocation5]  }
  0x13   :  { %54 = vset.pattern.permute.xlu0 %v104_v0  ;;  %v25_v2 = vld [vmem:[#allocation2] sm:$0xff]  ;;  %s42_s24 = sshll.u32 %s105_s23, 4  ;;  %s43_s24 = int_to_ptr.vmem [resolvable:$true] %s42_s24 }
  0x14   :  { %29 = vperm.xlu0 %54, %v24_v1   ;;  %s77_s1 = scalar_lea.vmem %s43_s24, 256  ;;  %p82_p9 = scmp.lt.s32.totalorder %s43_s24, %s43_s24 }
  0x15   :  { %p78_p8 = scmp.ne.s32.totalorder %s43_s24, %s77_s1  ;;  %p83_p10 = scmp.lt.s32.totalorder %s77_s1, %s77_s1 }
  0x17   :  { %p84_p11 = por %p83_p10, %p82_p9 }
  0x19   :  { %p85_p12 = pnand %p84_p11, %p78_p8 }
  0x93   :  { %v30_v4 = vpop.permute.xlu0 %29 }
  0x94   :  { %v32_v5 = vmul.f32 %v30_v4, %v25_v2  ;;  %v33_v6 = vmul.f32 %v30_v4, %v26_v3 }
  0x96   :  { %34 = vst [vmem:[#allocation5] sm:$0xff] %v32_v5  ;;  %35 = vst [vmem:[#allocation5 + $0x8] sm:$0xff] %v33_v6 }
  0x97   :  { %88 = shalt.err (!%p85_p12)
}
  0x98   :  { %s89_s26 = scalar_lea.hbm %s150_s2, 256 }
  0x99   :  { %p90_p13 = scmp.ne.s32.totalorder %s150_s2, %s89_s26  ;;  %p93_p0 = scmp.lt.u32.totalorder %s89_s26, %s150_s2 }
  0x9b   :  { %p95_p1 = pnand %p93_p0, %p90_p13 }
  0x9d   :  { %98 = shalt.err (!%p95_p1)
}
  0x9e   :  { %45 = dma.vmem_to_hbm [thread:$0]  %s43_s24, 256, %s150_s2, [#allocation4]  }
  0x9f   :  { %101 = dma.done.wait [#allocation4], 256  }
  0xa0   :  { %102 = vsyncadd [#allocation4], 4294967040 }
  0xa1   :  { %49 = vsyncpa [#allocation3], 1 }
  0xa2   :  { %50 = vsyncpa [#allocation4], 1 }

</bundles_post_ra>
